<compile_context>
chip_gen: v6e
topology: v6e:2x2x1
jax: 0.10.0
libtpu: 0.0.40
codegen_flags: <defaults>
</compile_context>

<pallas_src>
import functools

import jax
import jax.numpy as jnp
from jax.experimental import pallas as pl
from jax.experimental.pallas import tpu as pltpu


def _round_up(x: int, m: int) -> int:
    return (x + m - 1) // m * m


def _int_pow(x, n: int):
    """x**n for integer n >= 1 via repeated multiplication (VALU only, no exp/log)."""
    result = None
    base = x
    while n > 0:
        if n & 1:
            result = base if result is None else result * base
        n >>= 1
        if n:
            base = base * base
    return result


def _lp_dist_kernel(x1_ref, x2_ref, o_ref, acc_ref, *, p: int, C: int, TC: int,
                    mask_c: bool):
    # x1_ref / x2_ref: (TB, TC, ts) input dtype.  o_ref: (TB, ts).  acc: f32.
    c = pl.program_id(2)

    # Subtract in the input dtype (matches torch semantics), upcast once.
    diff = (x2_ref[...] - x1_ref[...]).astype(jnp.float32)
    if p == 1:
        term = jnp.abs(diff)
    elif p == 2:
        term = diff * diff
    elif p % 2 == 0:
        term = _int_pow(diff * diff, p // 2)
    else:
        term = _int_pow(jnp.abs(diff), p)

    if mask_c:
        # Ragged channel edge: zero contributions from OOB channels of the
        # last (partial) channel block before the reduce.
        ch = jax.lax.broadcasted_iota(jnp.int32, term.shape, dimension=1)
        term = jnp.where(c * TC + ch < C, term, 0.0)

    part = jnp.sum(term, axis=1)                       # (TB, ts) f32

    @pl.when(c == 0)
    def _():
        acc_ref[...] = part                            # first write, no zero-init

    @pl.when(c > 0)
    def _():
        acc_ref[...] += part

    @pl.when(c == pl.num_programs(2) - 1)
    def _():
        acc = acc_ref[...]
        if p == 1:
            res = acc
        elif p == 2:
            res = jnp.sqrt(acc)
        else:
            res = acc ** (1.0 / p)                     # once per output tile
        o_ref[...] = res.astype(o_ref.dtype)


def lp_distance(x1: jax.Array, x2: jax.Array, *, p: int = 2, dim: int = 1,
                keepdim: bool = False) -> jax.Array:
    """Lp norm of (x2 - x1) along the channel dim for NCHW inputs."""
    assert x1.shape == x2.shape
    assert x1.dtype == x2.dtype
    # TODO(synk): only dim=1 (channel) reduction is implemented.
    assert dim == 1, "this kernel reduces over the channel dim (dim=1)"

    B, C, H, W = x1.shape
    S = H * W
    out_dtype = x1.dtype
    in_item = jnp.dtype(x1.dtype).itemsize
    out_item = jnp.dtype(out_dtype).itemsize

    # ---- generation-aware VMEM budget -------------------------------------
    try:
        vmem_cap = int(pltpu.get_tpu_info().vmem_capacity_bytes)
    except Exception:  # pragma: no cover - conservative fallback
        vmem_cap = 64 << 20
    buffer_budget = max(16 << 20, int(vmem_cap * 0.45))

    # ---- tile selection ----------------------------------------------------
    # Channel tile: whole C when it fits (no masking), else 64 (multiple of the
    # sublane packing for f32/bf16/int8); ragged edge masked in kernel.
    TC = C if C <= 128 else 64
    mask_c = (C % TC) != 0

    # Spatial (lane) tile: multiple of 128 or the full S.
    ts_target = 2048 if vmem_cap >= (96 << 20) else 1024
    ts = S if S <= 128 else min(_round_up(S, 128), ts_target)

    # Batch tile: multiple of 8 (or full B for tiny B).  Never TB=B for large
    # non-multiple-of-8 B -- ragged edge is handled by Pallas output masking.
    TB = B if B <= 8 else 8
    b_ceil = _round_up(B, 8)
    # Grow TB toward >= ~1 MiB per input block (per-step overhead floor).
    while (TB * TC * ts * in_item < (1 << 20)) and (TB < b_ceil) and (TB % 8 == 0):
        TB = min(TB * 2, b_ceil)

    def _est(tb, tc, t):  # 2 inputs x 2 buffers + double-buffered out + f32 acc
        return 4 * tb * tc * t * in_item + 2 * tb * t * out_item + tb * t * 4

    # Shrink to fit the per-generation working-set budget.
    while _est(TB, TC, ts) > buffer_budget:
        if ts > 128:
            ts = max(128, (ts // 2) // 128 * 128)
        elif TB > 8 and TB % 16 == 0:
            TB //= 2
        else:
            break

    grid_b = pl.cdiv(B, TB)
    grid_s = pl.cdiv(S, ts)
    grid_c = pl.cdiv(C, TC)

    # v7x has 2 TensorCores sharded over the "parallel" axes: make sure there
    # are >= 2 blocks to shard when the spatial extent is large enough.
    if grid_b * grid_s == 1 and S >= 512:
        ts = _round_up((S + 1) // 2, 128)
        grid_s = pl.cdiv(S, ts)

    est = _est(TB, TC, ts)
    vmem_limit = int(min(int(vmem_cap * 0.75), max(32 << 20, int(1.5 * est))))

    # ---- launch ------------------------------------------------------------
    x1f = x1.reshape(B, C, S)          # free metadata reshape, no HBM copy
    x2f = x2.reshape(B, C, S)

    in_spec = pl.BlockSpec((TB, TC, ts), lambda b, s, c: (b, c, s))
    out_spec = pl.BlockSpec((TB, ts), lambda b, s, c: (b, s))

    out_flat = pl.pallas_call(
        functools.partial(_lp_dist_kernel, p=p, C=C, TC=TC, mask_c=mask_c),
        out_shape=jax.ShapeDtypeStruct((B, S), out_dtype),
        grid=(grid_b, grid_s, grid_c),
        in_specs=[in_spec, in_spec],
        out_specs=out_spec,
        scratch_shapes=[pltpu.VMEM((TB, ts), jnp.float32)],
        compiler_params=pltpu.CompilerParams(
            dimension_semantics=("parallel", "parallel", "arbitrary"),
            vmem_limit_bytes=vmem_limit),
    )(x1f, x2f)

    out = out_flat.reshape(B, H, W)
    if keepdim:
        out = out[:, None, :, :]
    return out


def _ref_lp_distance(x1, x2, p=2, keepdim=False):
    diff = (x2 - x1).astype(jnp.float32)
    if p == 1:
        d = jnp.sum(jnp.abs(diff), axis=1, keepdims=keepdim)
    elif p == 2:
        d = jnp.sqrt(jnp.sum(diff * diff, axis=1, keepdims=keepdim))
    else:
        d = jnp.sum(jnp.abs(diff) ** p, axis=1, keepdims=keepdim) ** (1.0 / p)
    return d.astype(x1.dtype)


if __name__ == "__main__":
    key = jax.random.PRNGKey(0)
    k1, k2, k3, k4, k5, k6 = jax.random.split(key, 6)

    # 1) Small NCHW, f32, p=2.
    B, C, H, W = 2, 4, 16, 16
    x1 = jax.random.normal(k1, (B, C, H, W), dtype=jnp.float32)
    x2 = jax.random.normal(k2, (B, C, H, W), dtype=jnp.float32)
    d = lp_distance(x1, x2, p=2, dim=1, keepdim=False)
    jax.block_until_ready(d)
    assert d.shape == (B, H, W), d.shape
    assert jnp.allclose(d, _ref_lp_distance(x1, x2, p=2), atol=1e-5, rtol=1e-5)

    # Integer p>2 path (repeated-mul, final root once per tile).
    d3 = lp_distance(x1, x2, p=3, dim=1, keepdim=True)
    jax.block_until_ready(d3)
    assert d3.shape == (B, 1, H, W), d3.shape
    assert jnp.allclose(d3, _ref_lp_distance(x1, x2, p=3, keepdim=True),
                        atol=1e-5, rtol=1e-5)

    # 2) Ragged everything: partial batch block (B=10, TB=16), channel mask
    #    (C=130 -> TC=64), lane dim < 128 (S=63) -- all without any padding.
    B2, C2, H2, W2 = 10, 130, 7, 9
    y1 = jax.random.normal(k3, (B2, C2, H2, W2), dtype=jnp.float32)
    y2 = jax.random.normal(k4, (B2, C2, H2, W2), dtype=jnp.float32)
    d2 = lp_distance(y1, y2, p=2, dim=1, keepdim=True)
    jax.block_until_ready(d2)
    assert d2.shape == (B2, 1, H2, W2), d2.shape
    assert jnp.allclose(d2, _ref_lp_distance(y1, y2, p=2, keepdim=True),
                        atol=1e-4, rtol=1e-4)

    # 3) bf16 streaming path (subtract in bf16, accumulate in f32).
    B3, C3, H3, W3 = 2, 8, 16, 8
    z1 = jax.random.normal(k5, (B3, C3, H3, W3), dtype=jnp.bfloat16)
    z2 = jax.random.normal(k6, (B3, C3, H3, W3), dtype=jnp.bfloat16)
    d4 = lp_distance(z1, z2, p=2, dim=1, keepdim=False)
    jax.block_until_ready(d4)
    ref4 = _ref_lp_distance(z1, z2, p=2)
    assert d4.shape == (B3, H3, W3), d4.shape
    assert jnp.allclose(d4.astype(jnp.float32), ref4.astype(jnp.float32),
                        atol=5e-2, rtol=5e-2)

    print("KERNEL_OK")
</pallas_src>

<mosaic_0001>
module attributes {stable_mosaic.version = 11 : i64} {
  func.func @_lp_dist_kernel(%arg0: i32, %arg1: i32, %arg2: i32, %arg3: memref<2x4x256xf32, #tpu.memory_space<vmem>>, %arg4: memref<2x4x256xf32, #tpu.memory_space<vmem>>, %arg5: memref<2x256xf32, #tpu.memory_space<vmem>>, %arg6: memref<2x256xf32, #tpu.memory_space<vmem>>) attributes {dimension_semantics = [#tpu.dimension_semantics<parallel>, #tpu.dimension_semantics<parallel>, #tpu.dimension_semantics<arbitrary>], iteration_bounds = array<i64: 1, 1, 1>, scalar_prefetch = 0 : i64, scratch_operands = 1 : i64, tpu.core_type = #tpu.core_type<tc>, window_params = [{transform_indices = @transform_0, window_bounds = array<i64: 2, 4, 256>}, {transform_indices = @transform_1, window_bounds = array<i64: 2, 4, 256>}, {transform_indices = @transform_2, window_bounds = array<i64: 2, 256>}]} {
    %c0 = arith.constant 0 : index
    %c0_0 = arith.constant 0 : index
    %c0_1 = arith.constant 0 : index
    %0 = vector.load %arg4[%c0, %c0_0, %c0_1] : memref<2x4x256xf32, #tpu.memory_space<vmem>>, vector<2x4x256xf32>
    %c0_2 = arith.constant 0 : index
    %c0_3 = arith.constant 0 : index
    %c0_4 = arith.constant 0 : index
    %1 = vector.load %arg3[%c0_2, %c0_3, %c0_4] : memref<2x4x256xf32, #tpu.memory_space<vmem>>, vector<2x4x256xf32>
    %2 = arith.subf %0, %1 : vector<2x4x256xf32>
    %3 = arith.mulf %2, %2 : vector<2x4x256xf32>
    %cst = arith.constant dense<0.000000e+00> : vector<2x256xf32>
    %4 = vector.multi_reduction <add>, %3, %cst [1] : vector<2x4x256xf32> to vector<2x256xf32>
    %c0_i32 = arith.constant 0 : i32
    %5 = arith.cmpi eq, %arg2, %c0_i32 : i32
    %6 = arith.extui %5 : i1 to i32
    %c0_i32_5 = arith.constant 0 : i32
    %7 = arith.cmpi ne, %6, %c0_i32_5 : i32
    scf.if %7 {
      %c0_10 = arith.constant 0 : index
      %c0_11 = arith.constant 0 : index
      %14 = vector.load %arg6[%c0_10, %c0_11] : memref<2x256xf32, #tpu.memory_space<vmem>>, vector<2x256xf32>
      tpu.vector_store %arg6[%c0_10, %c0_11], %4 {strides = array<i32>} : memref<2x256xf32, #tpu.memory_space<vmem>>, vector<2x256xf32>,
    } else {
    }
    %c0_i32_6 = arith.constant 0 : i32
    %8 = arith.cmpi sgt, %arg2, %c0_i32_6 : i32
    %9 = arith.extui %8 : i1 to i32
    %c0_i32_7 = arith.constant 0 : i32
    %10 = arith.cmpi ne, %9, %c0_i32_7 : i32
    scf.if %10 {
      %c0_10 = arith.constant 0 : index
      %c0_11 = arith.constant 0 : index
      %14 = vector.load %arg6[%c0_10, %c0_11] : memref<2x256xf32, #tpu.memory_space<vmem>>, vector<2x256xf32>
      %15 = arith.addf %14, %4 : vector<2x256xf32>
      %c0_12 = arith.constant 0 : index
      %c0_13 = arith.constant 0 : index
      %16 = vector.load %arg6[%c0_12, %c0_13] : memref<2x256xf32, #tpu.memory_space<vmem>>, vector<2x256xf32>
      tpu.vector_store %arg6[%c0_12, %c0_13], %15 {strides = array<i32>} : memref<2x256xf32, #tpu.memory_space<vmem>>, vector<2x256xf32>,
    } else {
    }
    %c0_i32_8 = arith.constant 0 : i32
    %11 = arith.cmpi eq, %arg2, %c0_i32_8 : i32
    %12 = arith.extui %11 : i1 to i32
    %c0_i32_9 = arith.constant 0 : i32
    %13 = arith.cmpi ne, %12, %c0_i32_9 : i32
    scf.if %13 {
      %c0_10 = arith.constant 0 : index
      %c0_11 = arith.constant 0 : index
      %14 = vector.load %arg6[%c0_10, %c0_11] : memref<2x256xf32, #tpu.memory_space<vmem>>, vector<2x256xf32>
      %15 = math.sqrt %14 : vector<2x256xf32>
      %c0_12 = arith.constant 0 : index
      %c0_13 = arith.constant 0 : index
      %16 = vector.load %arg5[%c0_12, %c0_13] : memref<2x256xf32, #tpu.memory_space<vmem>>, vector<2x256xf32>
      tpu.vector_store %arg5[%c0_12, %c0_13], %15 {strides = array<i32>} : memref<2x256xf32, #tpu.memory_space<vmem>>, vector<2x256xf32>,
    } else {
    }
    return
  }
  func.func @transform_0(%arg0: i32, %arg1: i32, %arg2: i32) -> (i32, i32, i32) {
    %c0_i32 = arith.constant 0 : i32
    return %arg0, %arg2, %arg1 : i32, i32, i32
  }
  func.func @transform_1(%arg0: i32, %arg1: i32, %arg2: i32) -> (i32, i32, i32) {
    %c0_i32 = arith.constant 0 : i32
    return %arg0, %arg2, %arg1 : i32, i32, i32
  }
  func.func @transform_2(%arg0: i32, %arg1: i32, %arg2: i32) -> (i32, i32) {
    %c0_i32 = arith.constant 0 : i32
    return %arg0, %arg1 : i32, i32
  }
}

</mosaic_0001>

<bundles_post_ra>
// kernel: tpu_custom_call.1
= control target key start
LH: loop header
LB: loop body
LE: loop exit
PB: predicated region body
PF: predicated region fallthrough
CT: control target
= control target key end

     0   :  { %7 = vsyncpa [#allocation4], 0  ;;  %s295_s0 = inlined_call_operand.hbm [shape: f32[2,4,256], index: 0, kind: input, shape index: {}]   ;;  %s296_s1 = inlined_call_operand.hbm [shape: f32[2,4,256], index: 1, kind: input, shape index: {}]   ;;  %s297_s2 = inlined_call_operand.hbm [shape: f32[2,256], index: 2, kind: output, shape index: {}]  }
   0x1   :  { %8 = vsyncpa [#allocation7], 0 }
   0x2   :  { %9 = vsyncpa [#allocation5], 0  ;;  %s265_s9 = smov [#allocation3]  }
   0x3   :  { %s15_s10 = sshll.u32 %s265_s9, 4  ;;  %s16_s10 = int_to_ptr.vmem [resolvable:$true] %s15_s10 }
   0x4   :  { %s207_s11 = scalar_lea.vmem %s16_s10, 256  ;;  %p212_p1 = scmp.lt.s32.totalorder %s16_s10, %s16_s10 }
   0x5   :  { %p208_p0 = scmp.ne.s32.totalorder %s16_s10, %s207_s11  ;;  %p213_p2 = scmp.lt.s32.totalorder %s207_s11, %s207_s11 }
   0x7   :  { %p214_p3 = por %p213_p2, %p212_p1 }
   0x9   :  { %p215_p4 = pnand %p214_p3, %p208_p0 }
   0xb   :  { %218 = shalt.err (!%p215_p4)
}
   0xc   :  { %s266_s12 = smov 128   ;;  %s267_s13 = smov 8  }
   0xd   :  { %21 = dma.hbm_to_vmem [thread:$0]  %s295_s0, 256, %s16_s10, [#allocation4], %s266_s12, %s266_s12, %s267_s13  }
   0xe   :  { %s268_s16 = smov [#allocation6]  }
   0xf   :  { %s27_s17 = sshll.u32 %s268_s16, 4  ;;  %s28_s17 = int_to_ptr.vmem [resolvable:$true] %s27_s17 }
  0x10   :  { %s227_s18 = scalar_lea.vmem %s28_s17, 256  ;;  %p232_p6 = scmp.lt.s32.totalorder %s28_s17, %s28_s17 }
  0x11   :  { %p228_p5 = scmp.ne.s32.totalorder %s28_s17, %s227_s18  ;;  %p233_p7 = scmp.lt.s32.totalorder %s227_s18, %s227_s18 }
  0x13   :  { %p234_p8 = por %p233_p7, %p232_p6 }
  0x15   :  { %p235_p9 = pnand %p234_p8, %p228_p5 }
  0x17   :  { %238 = shalt.err (!%p235_p9)
}
  0x18   :  { %33 = dma.hbm_to_vmem [thread:$0]  %s296_s1, 256, %s28_s17, [#allocation7], %s266_s12, %s266_s12, %s267_s13  }
  0x19   :  { %259 = dma.done.wait [#allocation4], 256  }
  0x1a   :  { %260 = vsyncadd [#allocation4], 4294967040 }
  0x1b   :  { %261 = dma.done.wait [#allocation7], 256  }
  0x1c   :  { %262 = vsyncadd [#allocation7], 4294967040  ;;  %v40_v0 = vld [vmem:[#allocation6] sm:$0xff]  ;;  %v41_v1 = vld [vmem:[#allocation6 + $0x8] sm:$0xff]  ;;  %vm54_vm0 = vcmask 1043456   ;;  %v95_v26 = vlaneseq  ;;  %vm112_vm1 = vcmask 1041409  }
  0x1d   :  { %v42_v2 = vld [vmem:[#allocation3] sm:$0xff]  ;;  %v43_v3 = vld [vmem:[#allocation3 + $0x8] sm:$0xff]  ;;  %v269_v24 = vmov 1983009808   ;;  %vm114_vm2 = vcmask 1043459   ;;  %vm116_vm3 = vcmask 1045509  }
  0x1e   :  { %v44_v4 = vsub.f32 %v40_v0, %v42_v2  ;;  %v45_v5 = vsub.f32 %v41_v1, %v43_v3  ;;  %v93_v25 = vunpack.c.l.s4 %v269_v24  ;;  %v96_v36 = vshrl.u32 %v95_v26, 7  ;;  %s270_s0 = smov [#allocation8]  }
  0x1f   :  { %vm118_vm4 = vcmask 1047559   ;;  %s181_s1 = sshll.u32 %s270_s0, 4  ;;  %s182_s1 = int_to_ptr.vmem [resolvable:$true] %s181_s1 }
  0x20   :  { %v46_v6 = vmul.f32 %v44_v4, %v44_v4  ;;  %v47_v7 = vmul.f32 %v45_v5, %v45_v5  ;;  %v94_v35 = vunpack.c.0.s8 %v93_v25  ;;  %s239_s21 = scalar_lea.vmem %s182_s1, 64  ;;  %p244_p11 = scmp.lt.s32.totalorder %s182_s1, %s182_s1 }
  0x21   :  { %p240_p10 = scmp.ne.s32.totalorder %s182_s1, %s239_s21  ;;  %p245_p12 = scmp.lt.s32.totalorder %s239_s21, %s239_s21 }
  0x22   :  { %v50_v8 = vcombine.high %v46_v6, %v46_v6  ;;  %v55_v9 = vsel %vm54_vm0, %v46_v6, 0.0  ;;  %v51_v10 = vcombine.high %v47_v7, %v47_v7  ;;  %v69_v12 = vsel %vm54_vm0, %v47_v7, 0.0 }
  0x23   :  { %v56_v11 = vrot.slane %v55_v9, 4  ;;  %v70_v14 = vrot.slane %v69_v12, 4  ;;  %v97_v43 = vsub.s32 %v94_v35, %v96_v36  ;;  %p246_p13 = por %p245_p12, %p244_p11 }
  0x24   :  { %v62_v13 = vsel %vm54_vm0, %v50_v8, 0.0  ;;  %v76_v17 = vsel %vm54_vm0, %v51_v10, 0.0 }
  0x25   :  { %v57_v15 = vadd.f32 %v56_v11, %v55_v9  ;;  %v63_v16 = vrot.slane %v62_v13, 4  ;;  %v71_v18 = vadd.f32 %v70_v14, %v69_v12  ;;  %v77_v19 = vrot.slane %v76_v17, 4  ;;  %p247_p0 = pnand %p246_p13, %p240_p10 }
  0x27   :  { %v58_v20 = vrot.slane %v57_v15, 2  ;;  %v64_v21 = vadd.f32 %v63_v16, %v62_v13  ;;  %v72_v22 = vrot.slane %v71_v18, 2  ;;  %v78_v23 = vadd.f32 %v77_v19, %v76_v17 }
  0x29   :  { %v59_v27 = vadd.f32 %v58_v20, %v57_v15  ;;  %v65_v28 = vrot.slane %v64_v21, 2  ;;  %v73_v29 = vadd.f32 %v72_v22, %v71_v18  ;;  %v79_v30 = vrot.slane %v78_v23, 2 }
  0x2b   :  { %v60_v31 = vrot.slane %v59_v27, 1  ;;  %v66_v32 = vadd.f32 %v65_v28, %v64_v21  ;;  %v74_v33 = vrot.slane %v73_v29, 1  ;;  %v80_v34 = vadd.f32 %v79_v30, %v78_v23 }
  0x2d   :  { %v61_v37 = vadd.f32 %v60_v31, %v59_v27  ;;  %v67_v38 = vrot.slane %v66_v32, 1  ;;  %v75_v39 = vadd.f32 %v74_v33, %v73_v29  ;;  %v81_v40 = vrot.slane %v80_v34, 1 }
  0x2f   :  { %v68_v41 = vadd.f32 %v67_v38, %v66_v32  ;;  %v82_v42 = vadd.f32 %v81_v40, %v80_v34 }
  0x31   :  { %v91_v44 = vcombine.low %v61_v37, %v68_v41  ;;  %v99_v45 = vcombine.low %v75_v39, %v82_v42 }
  0x33   :  { %v98_v46 = vrot.slane %v91_v44, %v97_v43  ;;  %v106_v47 = vrot.slane %v99_v45, %v97_v43 }
  0x35   :  { %v111_v48 = vrot.slane %v106_v47, 7 }
  0x37   :  { %v113_v49 = vsel %vm112_vm1, %v111_v48, %v98_v46 }
  0x38   :  { %v115_v50 = vsel %vm114_vm2, %v111_v48, %v113_v49 }
  0x39   :  { %v117_v51 = vsel %vm116_vm3, %v111_v48, %v115_v50 }
  0x3a   :  { %v119_v52 = vsel %vm118_vm4, %v111_v48, %v117_v51 }
  0x3b   :  { %121 = vst [vmem:[#allocation2] sm:$0xf] %v119_v52 }
  0x42   :  { %v166_v53 = vld [vmem:[#allocation2] sm:$0xf] }
  0x43   :  { %197 = vrsqrt.f32 %v166_v53  ;;  %vm169_vm5 = vcmp.eq.f32.partialorder %v166_v53, inf  ;;  %v172_v56 = vand.u32 2147483648, %v166_v53  ;;  %vm171_vm6 = vcmp.eq.f32.partialorder %v166_v53, 0.0 }
  0x50   :  { %v198_v54 = vpop.eup %197 }
  0x51   :  { %v168_v55 = vmul.f32 %v198_v54, %v166_v53 }
  0x53   :  { %v170_v57 = vsel %vm169_vm5, %v166_v53, %v168_v55 }
  0x54   :  { %v173_v58 = vsel %vm171_vm6, %v172_v56, %v170_v57 }
  0x55   :  { %174 = vst [vmem:[#allocation8] sm:$0xf] %v173_v58 }
  0x56   :  { %250 = shalt.err (!%p247_p0)
}
  0x57   :  { %184 = dma.vmem_to_hbm [thread:$0]  %s182_s1, 64, %s297_s2, [#allocation5]  }
  0x58   :  { %263 = dma.done.wait [#allocation5], 64  }
  0x59   :  { %264 = vsyncadd [#allocation5], 4294967232 }
  0x5a   :  { %188 = vsyncpa [#allocation4], 1 }
  0x5b   :  { %189 = vsyncpa [#allocation7], 1 }
  0x5c   :  { %190 = vsyncpa [#allocation5], 1 }

</bundles_post_ra>
